<compile_context>
chip_gen: v6e
topology: v6e:2x2x1
jax: 0.10.0
libtpu: 0.0.40
codegen_flags: <defaults>
</compile_context>

<pallas_src>
import jax
import jax.numpy as jnp
from jax.experimental import pallas as pl
from jax.experimental.pallas import tpu as pltpu


def _round_up(v, m):
    return ((v + m - 1) // m) * m


def _read_encoder_kernel(x_ref, w_ref, b_ref, o_ref):
    # x_ref: (I, TN)   w_ref: (H, I)   b_ref: (H, 1)   o_ref: (H, TN)
    y = jnp.dot(w_ref[...], x_ref[...],
                preferred_element_type=jnp.float32)          # (H, TN) on the MXU
    y = y + b_ref[...]                                       # (H,1) lane-broadcast (VPU)
    o_ref[...] = jnp.clip(y, 0.0, 6.0).astype(o_ref.dtype)   # ReLU6


def read_video_encoder(x, W, b, *, max_tile_n=1024):
    """
    x: (B, input_dim, set_length) float32
    W: (hidden_dim, input_dim)    float32
    b: (hidden_dim,)              float32
    returns: (B, hidden_dim, set_length) float32
    """
    B, I, S = x.shape
    H, _ = W.shape
    N = B * S

    # --- layout plumbing: fold batch into the fused lane axis --------------
    # x[b, i, s] -> x_flat[i, b*S + s]
    x_flat = jnp.transpose(x, (1, 0, 2)).reshape(I, N)

    # Lane-dense tile of the fused axis: multiple of 128, capped at max_tile_n.
    tile_n = min(max_tile_n, _round_up(N, 128))
    n_pad = _round_up(N, tile_n)
    if n_pad != N:
        x_flat = jnp.pad(x_flat, ((0, 0), (0, n_pad - N)))
    grid_n = n_pad // tile_n

    b2d = b.reshape(H, 1)

    out_flat = pl.pallas_call(
        _read_encoder_kernel,
        out_shape=jax.ShapeDtypeStruct((H, n_pad), x.dtype),
        grid_spec=pltpu.PrefetchScalarGridSpec(
            num_scalar_prefetch=0,
            grid=(grid_n,),
            in_specs=[
                pl.BlockSpec((I, tile_n), lambda n: (0, n)),  # x tile (streamed)
                pl.BlockSpec((H, I), lambda n: (0, 0)),       # W (VMEM-resident)
                pl.BlockSpec((H, 1), lambda n: (0, 0)),       # bias (VMEM-resident)
            ],
            out_specs=pl.BlockSpec((H, tile_n), lambda n: (0, n)),
        ),
        compiler_params=pltpu.CompilerParams(
            dimension_semantics=("parallel",),
            vmem_limit_bytes=32 * 1024 * 1024,
        ),
        cost_estimate=pl.CostEstimate(
            flops=2 * H * I * n_pad,
            transcendentals=0,
            bytes_accessed=4 * (I * n_pad + H * I + H + H * n_pad),
        ),
    )(x_flat, W, b2d)

    # out_flat[h, b*S + s] -> out[b, h, s]  (layout the PyTorch module returns)
    out = jnp.transpose(out_flat[:, :N].reshape(H, B, S), (1, 0, 2))
    return out


if __name__ == "__main__":
    # Small, deterministic example shapes consistent with the module.
    B, I, S, H = 2, 4, 16, 32   # batch, input_dim, set_length, hidden_dim

    key = jax.random.PRNGKey(0)
    kx, kw, kb = jax.random.split(key, 3)
    x = jax.random.normal(kx, (B, I, S), dtype=jnp.float32)
    W = jax.random.normal(kw, (H, I), dtype=jnp.float32)   # nn.Parameter(torch.randn(H, I))
    b = jax.random.normal(kb, (H,), dtype=jnp.float32)     # nn.Parameter(torch.randn(H))

    fn = jax.jit(read_video_encoder)
    out = jax.block_until_ready(fn(x, W, b))

    # Pure-JAX reference check (same math as the PyTorch forward).
    ref = jnp.clip(jnp.einsum("hi,bis->bhs", W, x) + b[None, :, None], 0.0, 6.0)
    assert out.shape == (B, H, S)
    assert jnp.allclose(out, ref, atol=1e-5, rtol=1e-5)

    print("KERNEL_OK")
</pallas_src>

<mosaic_0001>
module attributes {stable_mosaic.version = 11 : i64} {
  func.func @_read_encoder_kernel(%arg0: i32, %arg1: memref<4x128xf32, #tpu.memory_space<vmem>>, %arg2: memref<32x4xf32, #tpu.memory_space<vmem>>, %arg3: memref<32x1xf32, #tpu.memory_space<vmem>>, %arg4: memref<32x128xf32, #tpu.memory_space<vmem>>) attributes {dimension_semantics = [#tpu.dimension_semantics<parallel>], iteration_bounds = array<i64: 1>, scalar_prefetch = 0 : i64, scratch_operands = 0 : i64, tpu.core_type = #tpu.core_type<tc>, window_params = [{transform_indices = @transform_0, window_bounds = array<i64: 4, 128>}, {pipeline_mode = #tpu.pipeline_mode<synchronous>, transform_indices = @transform_1, window_bounds = array<i64: 32, 4>}, {pipeline_mode = #tpu.pipeline_mode<synchronous>, transform_indices = @transform_2, window_bounds = array<i64: 32, 1>}, {transform_indices = @transform_3, window_bounds = array<i64: 32, 128>}]} {
    %c0 = arith.constant 0 : index
    %c0_0 = arith.constant 0 : index
    %0 = vector.load %arg2[%c0, %c0_0] : memref<32x4xf32, #tpu.memory_space<vmem>>, vector<32x4xf32>
    %c0_1 = arith.constant 0 : index
    %c0_2 = arith.constant 0 : index
    %1 = vector.load %arg1[%c0_1, %c0_2] : memref<4x128xf32, #tpu.memory_space<vmem>>, vector<4x128xf32>
    %cst = arith.constant dense<0.000000e+00> : vector<32x128xf32>
    %2 = tpu.matmul %0, %1, %cst {dimension_numbers = #tpu.dot_dimension_numbers<[1], [0], [0], [1], [0, 0, 1, 1], [], []>} : vector<32x4xf32>, vector<4x128xf32>, vector<32x128xf32> -> vector<32x128xf32>
    %c0_3 = arith.constant 0 : index
    %c0_4 = arith.constant 0 : index
    %3 = vector.load %arg3[%c0_3, %c0_4] : memref<32x1xf32, #tpu.memory_space<vmem>>, vector<32x1xf32>
    %4 = vector.broadcast %3 : vector<32x1xf32> to vector<32x128xf32>
    %5 = arith.addf %2, %4 : vector<32x128xf32>
    %cst_5 = arith.constant 0.000000e+00 : f32
    %cst_6 = arith.constant 6.000000e+00 : f32
    %6 = vector.broadcast %cst_5 : f32 to vector<32x128xf32>
    %7 = arith.maximumf %6, %5 : vector<32x128xf32>
    %8 = vector.broadcast %cst_6 : f32 to vector<32x128xf32>
    %9 = arith.minimumf %8, %7 : vector<32x128xf32>
    %c0_7 = arith.constant 0 : index
    %c0_8 = arith.constant 0 : index
    %10 = vector.load %arg4[%c0_7, %c0_8] : memref<32x128xf32, #tpu.memory_space<vmem>>, vector<32x128xf32>
    tpu.vector_store %arg4[%c0_7, %c0_8], %9 {strides = array<i32>} : memref<32x128xf32, #tpu.memory_space<vmem>>, vector<32x128xf32>,
    return
  }
  func.func @transform_0(%arg0: i32) -> (i32, i32) {
    %c0_i32 = arith.constant 0 : i32
    %c0_i32_0 = arith.constant 0 : i32
    return %c0_i32, %arg0 : i32, i32
  }
  func.func @transform_1(%arg0: i32) -> (i32, i32) {
    %c0_i32 = arith.constant 0 : i32
    %c0_i32_0 = arith.constant 0 : i32
    %c0_i32_1 = arith.constant 0 : i32
    return %c0_i32, %c0_i32_0 : i32, i32
  }
  func.func @transform_2(%arg0: i32) -> (i32, i32) {
    %c0_i32 = arith.constant 0 : i32
    %c0_i32_0 = arith.constant 0 : i32
    %c0_i32_1 = arith.constant 0 : i32
    return %c0_i32, %c0_i32_0 : i32, i32
  }
  func.func @transform_3(%arg0: i32) -> (i32, i32) {
    %c0_i32 = arith.constant 0 : i32
    %c0_i32_0 = arith.constant 0 : i32
    return %c0_i32, %arg0 : i32, i32
  }
}

</mosaic_0001>

<bundles_post_ra>
// kernel: read_video_encoder.1
= control target key start
LH: loop header
LB: loop body
LE: loop exit
PB: predicated region body
PF: predicated region fallthrough
CT: control target
= control target key end

     0   :  { %vm56_vm0 = vcmask 1043456   ;;  %vm43_vm1 = vcmask 31744   ;;  %v184_v3 = vmov 0   ;;  %s248_s0 = inlined_call_operand.vmem [shape: f32[4,128], index: 0, kind: input, shape index: {}]   ;;  %s249_s1 = inlined_call_operand.vmem [shape: f32[32,4], index: 1, kind: input, shape index: {}]   ;;  %s250_s2 = inlined_call_operand.vmem [shape: f32[32,1], index: 2, kind: input, shape index: {}]   ;;  %s251_s3 = inlined_call_operand.vmem [shape: f32[32,128], index: 3, kind: output, shape index: {}]  }
   0x1   :  { %v18_v0 = vld [vmem:[%s248_s0] sm:$0xf]  ;;  %v16_v2 = vld [vmem:[%s249_s1 + $0x10] sm:$0xff]  ;;  %183 = vset.pattern.permute.xlu1 %v184_v3  ;;  %182 = vset.pattern.permute.xlu0 %v184_v3  ;;  %v15_v4 = vld [vmem:[%s249_s1 + $0x8] sm:$0xff] }
   0x2   :  { %v14_v1 = vld [vmem:[%s249_s1] sm:$0xff]  ;;  %171 = vmatprep.subr.msk.mxu0 %vm56_vm0, %v18_v0  ;;  %179 = vmatprep.subr.msk.mxu1 %vm56_vm0, %v18_v0  ;;  %v17_v5 = vld [vmem:[%s249_s1 + $0x18] sm:$0xff]  ;;  %v21_v6 = vld [vmem:[%s250_s2 + $0x10] sm:$0xff] }
   0x3   :  { %172 = vmatpush3.msk.msra.mxu0 %vm56_vm0, %v18_v0  ;;  %180 = vmatpush3.msk.msra.mxu1 %vm56_vm0, %v18_v0  ;;  %v19_v7 = vld [vmem:[%s250_s2] sm:$0xff]  ;;  %v22_v8 = vld [vmem:[%s250_s2 + $0x18] sm:$0xff]  ;;  %v20_v9 = vld [vmem:[%s250_s2 + $0x8] sm:$0xff] }
   0x4   :  { %173 = vmatprep.mubr.msk.f32.mxu0 %vm43_vm1, %v14_v1  ;;  %176 = vmatprep.mubr.msk.f32.mxu1 %vm43_vm1, %v16_v2 }
   0x5   :  { %174 = vmatmul.mubr.msk.f32.vlgmr.msra.gmra.mxu0 %vm43_vm1, %v15_v4  ;;  %177 = vmatmul.mubr.msk.f32.vlgmr.msra.gmra.mxu1 %vm43_vm1, %v17_v5 }
   0x6   :  { %35 = vperm.xlu1 %183, %v21_v6   ;;  %25 = vperm.xlu0 %182, %v19_v7  }
   0xa   :  { %40 = vperm.xlu1 %183, %v22_v8   ;;  %30 = vperm.xlu0 %182, %v20_v9  }
  0x81   :  { %v36_v10 = vpop.permute.xlu1 %35  ;;  %v26_v11 = vpop.permute.xlu0 %25 }
  0x85   :  { %v41_v12 = vpop.permute.xlu1 %40  ;;  %v31_v13 = vpop.permute.xlu0 %30 }
  0xc5   :  { %v175_v14 = vpop.f32.mrf.mxu0  ;;  %v178_v15 = vpop.f32.mrf.mxu1 }
  0xc6   :  { %v132_v16 = vadd.f32 %v175_v14, %v31_v13  ;;  %v142_v17 = vadd.f32 %v178_v15, %v41_v12 }
  0xc7   :  { %v126_v18 = vpop.f32.mrf.mxu0  ;;  %v136_v19 = vpop.f32.mrf.mxu1 }
  0xc8   :  { %v146_v20 = vmax.f32 %v132_v16, 0.0  ;;  %v148_v21 = vmax.f32 %v142_v17, 0.0  ;;  %v127_v22 = vadd.f32 %v126_v18, %v26_v11  ;;  %v137_v23 = vadd.f32 %v136_v19, %v36_v10 }
  0xca   :  { %v150_v24 = vmin.f32 %v146_v20, 6.0  ;;  %v152_v25 = vmin.f32 %v148_v21, 6.0  ;;  %v145_v26 = vmax.f32 %v127_v22, 0.0  ;;  %v147_v27 = vmax.f32 %v137_v23, 0.0 }
  0xcc   :  { %154 = vst [vmem:[%s251_s3 + $0x8] sm:$0xff] %v150_v24  ;;  %156 = vst [vmem:[%s251_s3 + $0x18] sm:$0xff] %v152_v25  ;;  %v149_v28 = vmin.f32 %v145_v26, 6.0  ;;  %v151_v29 = vmin.f32 %v147_v27, 6.0 }
  0xce   :  { %153 = vst [vmem:[%s251_s3] sm:$0xff] %v149_v28  ;;  %155 = vst [vmem:[%s251_s3 + $0x10] sm:$0xff] %v151_v29 }

</bundles_post_ra>
